<compile_context>
chip_gen: v6e
topology: v6e:2x2x1
jax: 0.10.0
libtpu: 0.0.40
codegen_flags: <defaults>
</compile_context>

<pallas_src>
import functools

import jax
import jax.numpy as jnp
from jax.experimental import pallas as pl
from jax.experimental.pallas import tpu as pltpu


def _round_up(v, m):
    return ((v + m - 1) // m) * m


def _pad2(a, rows, cols):
    return jnp.pad(a, ((0, rows - a.shape[0]), (0, cols - a.shape[1])))


def _pick_tile(dim, prefs):
    for t in prefs:
        if dim % t == 0:
            return t
    return dim


def _choose_node_tiles(n):
    """Return (padded N, row tile tm, adj-reduction tile tk); tm, tk divide padded N.

    Tiles are sized so double-buffered adj/support tiles plus the f32 accumulator
    stay well under v7x's 64 MiB VMEM (and trivially fit v5e/v6e's 128 MiB).
    """
    n_pad = _round_up(max(n, 1), 128)
    if n_pad <= 512:
        return n_pad, n_pad, n_pad
    n_pad = _round_up(n_pad, 256)            # 256, not 512: less quadratic adj padding
    tm = 256
    tk = 512 if n_pad % 512 == 0 else 256
    return n_pad, tm, tk


# ----------------------------------------------------------------------------- #
# Kernel 1: tiled matmul  support = A @ B  (bf16 operands, f32 accumulation)
# ----------------------------------------------------------------------------- #
def _matmul_kernel(a_ref, b_ref, o_ref, acc_ref):
    @pl.when(pl.program_id(2) == 0)
    def _():
        acc_ref[...] = jnp.zeros_like(acc_ref)

    acc_ref[...] += jnp.dot(a_ref[...], b_ref[...],
                            preferred_element_type=jnp.float32)

    @pl.when(pl.program_id(2) == pl.num_programs(2) - 1)
    def _():
        o_ref[...] = acc_ref[...].astype(o_ref.dtype)


def _matmul(a, b, *, tm, out_dtype):
    m, k = a.shape
    _, n = b.shape
    tn = _pick_tile(n, (256, 128))
    tk = _pick_tile(k, (512, 256, 128))
    grid = (m // tm, n // tn, k // tk)

    out_b = jnp.dtype(out_dtype).itemsize
    # Double-buffered input/output tiles + f32 accumulator.
    vmem_est = (2 * (tm * tk * 2 + tk * tn * 2) + 2 * tm * tn * out_b + tm * tn * 4)
    vmem_limit = int(min(max(2 * vmem_est + (8 << 20), 32 << 20), 48 << 20))

    return pl.pallas_call(
        _matmul_kernel,
        grid=grid,
        in_specs=[pl.BlockSpec((tm, tk), lambda i, j, kk: (i, kk)),
                  pl.BlockSpec((tk, tn), lambda i, j, kk: (kk, j))],
        out_specs=pl.BlockSpec((tm, tn), lambda i, j, kk: (i, j)),
        out_shape=jax.ShapeDtypeStruct((m, n), out_dtype),
        scratch_shapes=[pltpu.VMEM((tm, tn), jnp.float32)],
        compiler_params=pltpu.CompilerParams(
            dimension_semantics=("parallel", "parallel", "arbitrary"),
            vmem_limit_bytes=vmem_limit),
        cost_estimate=pl.CostEstimate(
            flops=int(2 * m * n * k), transcendentals=0,
            bytes_accessed=int(a.nbytes + b.nbytes + m * n * out_b)),
    )(a, b)


# ----------------------------------------------------------------------------- #
# Kernel 2: propagation  out = adj @ support + bias  (+ optional relu / dropout)
# ----------------------------------------------------------------------------- #
def _propagate_kernel(*refs, apply_relu, use_mask):
    if use_mask:
        adj_ref, s_ref, b_ref, m_ref, o_ref, acc_ref = refs
    else:
        adj_ref, s_ref, b_ref, o_ref, acc_ref = refs
        m_ref = None

    k = pl.program_id(1)

    @pl.when(k == 0)
    def _():
        acc_ref[...] = jnp.zeros_like(acc_ref)

    acc_ref[...] += jnp.dot(adj_ref[...], s_ref[...],
                            preferred_element_type=jnp.float32)

    @pl.when(k == pl.num_programs(1) - 1)
    def _():
        h = acc_ref[...] + b_ref[...]
        if apply_relu:
            h = jnp.maximum(h, 0.0)
        if use_mask:
            h = h * m_ref[...]
        o_ref[...] = h.astype(o_ref.dtype)


def _propagate(adj_p, support, bias_row, mask, *, tm, tk, apply_relu, out_dtype):
    n_pad = adj_p.shape[0]
    h_pad = support.shape[1]
    grid = (n_pad // tm, n_pad // tk)
    use_mask = mask is not None

    in_specs = [
        pl.BlockSpec((tm, tk), lambda i, kk: (i, kk)),        # adj row/col tile
        pl.BlockSpec((tk, h_pad), lambda i, kk: (kk, 0)),     # support rows, k tile
        pl.BlockSpec((1, h_pad), lambda i, kk: (0, 0)),       # bias row (resident)
    ]
    args = [adj_p, support, bias_row]
    if use_mask:
        in_specs.append(pl.BlockSpec((tm, h_pad), lambda i, kk: (i, 0)))  # dropout mask
        args.append(mask)

    out_b = jnp.dtype(out_dtype).itemsize
    vmem_est = (2 * (tm * tk * 2 + tk * h_pad * 2 + h_pad * 4
                     + (tm * h_pad * 4 if use_mask else 0))
                + 2 * tm * h_pad * out_b + tm * h_pad * 4)
    vmem_limit = int(min(max(2 * vmem_est + (8 << 20), 32 << 20), 48 << 20))

    flops = 2 * n_pad * n_pad * h_pad
    bytes_accessed = (adj_p.nbytes + support.nbytes * (n_pad // tm)
                      + bias_row.nbytes + (mask.nbytes if use_mask else 0)
                      + n_pad * h_pad * out_b)

    kernel = functools.partial(_propagate_kernel, apply_relu=bool(apply_relu),
                               use_mask=use_mask)

    return pl.pallas_call(
        kernel,
        grid=grid,
        in_specs=in_specs,
        out_specs=pl.BlockSpec((tm, h_pad), lambda i, kk: (i, 0)),
        out_shape=jax.ShapeDtypeStruct((n_pad, h_pad), out_dtype),
        scratch_shapes=[pltpu.VMEM((tm, h_pad), jnp.float32)],
        compiler_params=pltpu.CompilerParams(
            dimension_semantics=("parallel", "arbitrary"),
            vmem_limit_bytes=vmem_limit),
        cost_estimate=pl.CostEstimate(flops=int(flops), transcendentals=0,
                                      bytes_accessed=int(bytes_accessed)),
    )(*args)


# ----------------------------------------------------------------------------- #
# Full GCN forward
# ----------------------------------------------------------------------------- #
def gcn_forward(x, adj, w1, b1, w2, b2, *, dropout_p=0.5, training=False, seed=0):
    n, f = x.shape
    nhid = w1.shape[1]
    nout = w2.shape[1]

    n_pad, tm, tk = _choose_node_tiles(n)
    f_pad = _round_up(f, 128)
    h_pad = _round_up(nhid, 128)
    o_pad = _round_up(nout, 128)

    # Pad to (8,128)-friendly shapes; cast MXU operands to bf16 (f32 accumulation in
    # the kernels).  Padded adj columns are zero, so padding never leaks into out[:n].
    adj_p = _pad2(jnp.asarray(adj, jnp.float32), n_pad, n_pad).astype(jnp.bfloat16)
    x_p = _pad2(jnp.asarray(x, jnp.float32), n_pad, f_pad).astype(jnp.bfloat16)
    w1_p = _pad2(jnp.asarray(w1, jnp.float32), f_pad, h_pad).astype(jnp.bfloat16)
    w2_p = _pad2(jnp.asarray(w2, jnp.float32), h_pad, o_pad).astype(jnp.bfloat16)
    b1_p = _pad2(jnp.asarray(b1, jnp.float32).reshape(1, -1), 1, h_pad)
    b2_p = _pad2(jnp.asarray(b2, jnp.float32).reshape(1, -1), 1, o_pad)

    # Dropout: host-generated, scaled keep-mask, fused into the layer-1 epilogue.
    # TODO(synk): statistically equivalent to torch F.dropout (inverted dropout) but
    # not bit-identical to torch's RNG stream.
    mask = None
    if training and dropout_p > 0.0:
        if dropout_p >= 1.0:
            mask = jnp.zeros((n_pad, h_pad), jnp.float32)
        else:
            keep = jax.random.bernoulli(jax.random.PRNGKey(seed),
                                        1.0 - dropout_p, (n_pad, h_pad))
            mask = keep.astype(jnp.float32) * jnp.float32(1.0 / (1.0 - dropout_p))

    # Layer 1: support1 = x @ W1 computed ONCE, then h = dropout(relu(adj@support1 + b1)).
    support1 = _matmul(x_p, w1_p, tm=tm, out_dtype=jnp.bfloat16)
    h = _propagate(adj_p, support1, b1_p, mask, tm=tm, tk=tk, apply_relu=True,
                   out_dtype=jnp.bfloat16)

    # Layer 2: out = adj @ (h @ W2) + b2.
    # TODO(synk): when bf16 adj fits VMEM, keep it resident across both propagation
    # passes (single HBM stream of the N^2 term) via a fused two-phase kernel.
    # TODO(synk): int8 (v5e/v6e) or fp8 (v7x) adj with a per-row scale would halve
    # the dominant N^2 HBM stream.
    # TODO(synk): for tiny graphs (N << 128), batch many graphs along a leading grid
    # axis to amortize per-step launch/DMA overhead.
    support2 = _matmul(h, w2_p, tm=tm, out_dtype=jnp.bfloat16)
    out = _propagate(adj_p, support2, b2_p, None, tm=tm, tk=tk, apply_relu=False,
                     out_dtype=jnp.float32)
    return out[:n, :nout]


def _reference(x, adj, w1, b1, w2, b2):
    h = jnp.maximum(adj @ (x @ w1) + b1[None, :], 0.0)
    return adj @ (h @ w2) + b2[None, :]


if __name__ == "__main__":
    # Small, deterministic problem: N nodes, nfeat -> nhid -> nout
    N, NFEAT, NHID, NOUT = 8, 16, 32, 8
    DROPOUT = 0.5

    key = jax.random.PRNGKey(0)
    kx, kadj, kw1, kb1, kw2, kb2 = jax.random.split(key, 6)

    x = jax.random.normal(kx, (N, NFEAT), dtype=jnp.float32)

    # Symmetric, row-normalized adjacency with self-loops (typical GCN preprocessing).
    a = (jax.random.uniform(kadj, (N, N)) > 0.5).astype(jnp.float32)
    a = jnp.maximum(a, a.T) + jnp.eye(N, dtype=jnp.float32)
    adj = a / jnp.sum(a, axis=1, keepdims=True)

    # Kipf GraphConvolution init: U(-stdv, stdv), stdv = 1/sqrt(out_features)
    stdv1 = 1.0 / jnp.sqrt(jnp.float32(NHID))
    stdv2 = 1.0 / jnp.sqrt(jnp.float32(NOUT))
    w1 = jax.random.uniform(kw1, (NFEAT, NHID), minval=-stdv1, maxval=stdv1,
                            dtype=jnp.float32)
    b1 = jax.random.uniform(kb1, (NHID,), minval=-stdv1, maxval=stdv1,
                            dtype=jnp.float32)
    w2 = jax.random.uniform(kw2, (NHID, NOUT), minval=-stdv2, maxval=stdv2,
                            dtype=jnp.float32)
    b2 = jax.random.uniform(kb2, (NOUT,), minval=-stdv2, maxval=stdv2,
                            dtype=jnp.float32)

    # Eval-mode forward (dropout is identity, matching F.dropout(training=False)).
    out = gcn_forward(x, adj, w1, b1, w2, b2, dropout_p=DROPOUT, training=False)
    out = jax.block_until_ready(out)

    ref = _reference(x, adj, w1, b1, w2, b2)
    assert out.shape == (N, NOUT)
    # bf16 MXU operands with f32 accumulation -> compare with a loose tolerance.
    assert jnp.allclose(out, ref, atol=3e-2, rtol=3e-2), "mismatch vs JAX reference"

    # Training-mode smoke test of the fused dropout-mask path.
    out_tr = gcn_forward(x, adj, w1, b1, w2, b2, dropout_p=DROPOUT, training=True,
                         seed=123)
    out_tr = jax.block_until_ready(out_tr)
    assert out_tr.shape == (N, NOUT)
    assert bool(jnp.all(jnp.isfinite(out_tr)))

    print("KERNEL_OK")
</pallas_src>

<mosaic_0001>
module attributes {stable_mosaic.version = 11 : i64} {
  func.func @_matmul_kernel(%arg0: i32, %arg1: i32, %arg2: i32, %arg3: memref<128x128xbf16, #tpu.memory_space<vmem>>, %arg4: memref<128x128xbf16, #tpu.memory_space<vmem>>, %arg5: memref<128x128xbf16, #tpu.memory_space<vmem>>, %arg6: memref<128x128xf32, #tpu.memory_space<vmem>>) attributes {dimension_semantics = [#tpu.dimension_semantics<parallel>, #tpu.dimension_semantics<parallel>, #tpu.dimension_semantics<arbitrary>], iteration_bounds = array<i64: 1, 1, 1>, scalar_prefetch = 0 : i64, scratch_operands = 1 : i64, tpu.core_type = #tpu.core_type<tc>, window_params = [{transform_indices = @transform_0, window_bounds = array<i64: 128, 128>}, {transform_indices = @transform_1, window_bounds = array<i64: 128, 128>}, {transform_indices = @transform_2, window_bounds = array<i64: 128, 128>}]} {
    %c0_i32 = arith.constant 0 : i32
    %0 = arith.cmpi eq, %arg2, %c0_i32 : i32
    %1 = arith.extui %0 : i1 to i32
    %c0_i32_0 = arith.constant 0 : i32
    %2 = arith.cmpi ne, %1, %c0_i32_0 : i32
    scf.if %2 {
      %cst_10 = arith.constant 0.000000e+00 : f32
      %12 = vector.broadcast %cst_10 : f32 to vector<128x128xf32>
      %c0_11 = arith.constant 0 : index
      %c0_12 = arith.constant 0 : index
      %13 = vector.load %arg6[%c0_11, %c0_12] : memref<128x128xf32, #tpu.memory_space<vmem>>, vector<128x128xf32>
      tpu.vector_store %arg6[%c0_11, %c0_12], %12 {strides = array<i32>} : memref<128x128xf32, #tpu.memory_space<vmem>>, vector<128x128xf32>,
    } else {
    }
    %c0 = arith.constant 0 : index
    %c0_1 = arith.constant 0 : index
    %3 = vector.load %arg6[%c0, %c0_1] : memref<128x128xf32, #tpu.memory_space<vmem>>, vector<128x128xf32>
    %c0_2 = arith.constant 0 : index
    %c0_3 = arith.constant 0 : index
    %4 = vector.load %arg3[%c0_2, %c0_3] : memref<128x128xbf16, #tpu.memory_space<vmem>>, vector<128x128xbf16>
    %c0_4 = arith.constant 0 : index
    %c0_5 = arith.constant 0 : index
    %5 = vector.load %arg4[%c0_4, %c0_5] : memref<128x128xbf16, #tpu.memory_space<vmem>>, vector<128x128xbf16>
    %cst = arith.constant dense<0.000000e+00> : vector<128x128xf32>
    %6 = tpu.matmul %4, %5, %cst {dimension_numbers = #tpu.dot_dimension_numbers<[1], [0], [0], [1], [0, 0, 1, 1], [], []>} : vector<128x128xbf16>, vector<128x128xbf16>, vector<128x128xf32> -> vector<128x128xf32>
    %7 = arith.addf %3, %6 : vector<128x128xf32>
    %c0_6 = arith.constant 0 : index
    %c0_7 = arith.constant 0 : index
    %8 = vector.load %arg6[%c0_6, %c0_7] : memref<128x128xf32, #tpu.memory_space<vmem>>, vector<128x128xf32>
    tpu.vector_store %arg6[%c0_6, %c0_7], %7 {strides = array<i32>} : memref<128x128xf32, #tpu.memory_space<vmem>>, vector<128x128xf32>,
    %c0_i32_8 = arith.constant 0 : i32
    %9 = arith.cmpi eq, %arg2, %c0_i32_8 : i32
    %10 = arith.extui %9 : i1 to i32
    %c0_i32_9 = arith.constant 0 : i32
    %11 = arith.cmpi ne, %10, %c0_i32_9 : i32
    scf.if %11 {
      %c0_10 = arith.constant 0 : index
      %c0_11 = arith.constant 0 : index
      %12 = vector.load %arg6[%c0_10, %c0_11] : memref<128x128xf32, #tpu.memory_space<vmem>>, vector<128x128xf32>
      %13 = arith.truncf %12 : vector<128x128xf32> to vector<128x128xbf16>
      %c0_12 = arith.constant 0 : index
      %c0_13 = arith.constant 0 : index
      %14 = vector.load %arg5[%c0_12, %c0_13] : memref<128x128xbf16, #tpu.memory_space<vmem>>, vector<128x128xbf16>
      tpu.vector_store %arg5[%c0_12, %c0_13], %13 {strides = array<i32>} : memref<128x128xbf16, #tpu.memory_space<vmem>>, vector<128x128xbf16>,
    } else {
    }
    return
  }
  func.func @transform_0(%arg0: i32, %arg1: i32, %arg2: i32) -> (i32, i32) {
    %c0_i32 = arith.constant 0 : i32
    return %arg0, %arg2 : i32, i32
  }
  func.func @transform_1(%arg0: i32, %arg1: i32, %arg2: i32) -> (i32, i32) {
    %c0_i32 = arith.constant 0 : i32
    return %arg2, %arg1 : i32, i32
  }
  func.func @transform_2(%arg0: i32, %arg1: i32, %arg2: i32) -> (i32, i32) {
    %c0_i32 = arith.constant 0 : i32
    return %arg0, %arg1 : i32, i32
  }
}

</mosaic_0001>

<bundles_post_ra>
// kernel: tpu_custom_call.1
= control target key start
LH: loop header
LB: loop body
LE: loop exit
PB: predicated region body
PF: predicated region fallthrough
CT: control target
= control target key end

     0   :  { %7 = vsyncpa [#allocation4], 0  ;;  %s735_s0 = inlined_call_operand.hbm [shape: bf16[128,128], index: 0, kind: input, shape index: {}]   ;;  %s736_s1 = inlined_call_operand.hbm [shape: bf16[128,128], index: 1, kind: input, shape index: {}]   ;;  %s737_s2 = inlined_call_operand.hbm [shape: bf16[128,128], index: 2, kind: output, shape index: {}]  }
   0x1   :  { %8 = vsyncpa [#allocation7], 0 }
   0x2   :  { %9 = vsyncpa [#allocation5], 0  ;;  %s697_s9 = smov [#allocation3]  }
   0x3   :  { %s15_s10 = sshll.u32 %s697_s9, 4  ;;  %s16_s10 = int_to_ptr.vmem [resolvable:$true] %s15_s10 }
   0x4   :  { %s639_s11 = scalar_lea.vmem %s16_s10, 1024  ;;  %p644_p1 = scmp.lt.s32.totalorder %s16_s10, %s16_s10 }
   0x5   :  { %p640_p0 = scmp.ne.s32.totalorder %s16_s10, %s639_s11  ;;  %p645_p2 = scmp.lt.s32.totalorder %s639_s11, %s639_s11 }
   0x7   :  { %p646_p3 = por %p645_p2, %p644_p1 }
   0x9   :  { %p647_p4 = pnand %p646_p3, %p640_p0 }
   0xb   :  { %650 = shalt.err (!%p647_p4)
}
   0xc   :  { %s698_s12 = smov 64   ;;  %s699_s13 = smov 4  }
   0xd   :  { %21 = dma.hbm_to_vmem [thread:$0]  %s735_s0, 1024, %s16_s10, [#allocation4], %s698_s12, %s698_s12, %s699_s13  }
   0xe   :  { %s700_s16 = smov [#allocation6]  }
   0xf   :  { %s27_s17 = sshll.u32 %s700_s16, 4  ;;  %s28_s17 = int_to_ptr.vmem [resolvable:$true] %s27_s17 }
  0x10   :  { %s659_s18 = scalar_lea.vmem %s28_s17, 1024  ;;  %p664_p6 = scmp.lt.s32.totalorder %s28_s17, %s28_s17 }
  0x11   :  { %p660_p5 = scmp.ne.s32.totalorder %s28_s17, %s659_s18  ;;  %p665_p7 = scmp.lt.s32.totalorder %s659_s18, %s659_s18 }
  0x13   :  { %p666_p8 = por %p665_p7, %p664_p6 }
  0x15   :  { %p667_p9 = pnand %p666_p8, %p660_p5 }
  0x17   :  { %670 = shalt.err (!%p667_p9)
}
  0x18   :  { %33 = dma.hbm_to_vmem [thread:$0]  %s736_s1, 1024, %s28_s17, [#allocation7], %s698_s12, %s698_s12, %s699_s13  }
  0x19   :  { %691 = dma.done.wait [#allocation4], 1024  }
  0x1a   :  { %692 = vsyncadd [#allocation4], 4294966272 }
  0x1b   :  { %693 = dma.done.wait [#allocation7], 1024  }
  0x1c   :  { %694 = vsyncadd [#allocation7], 4294966272  ;;  %v615_v0 = vld [vmem:[#allocation6 + $0x38] sm:$0xff]   ;;  %v616_v1 = vld [vmem:[#allocation6 + $0x30] sm:$0xff]   ;;  %s701_s0 = smov [#allocation8]  }
  0x1d   :  { %562 = vmatprep.subr.bf16.mxu0 %v615_v0  ;;  %594 = vmatprep.subr.bf16.mxu1 %v615_v0  ;;  %v617_v2 = vld [vmem:[#allocation6 + $0x28] sm:$0xff]   ;;  %v618_v3 = vld [vmem:[#allocation6 + $0x20] sm:$0xff]   ;;  %v619_v6 = vld [vmem:[#allocation6 + $0x18] sm:$0xff]   ;;  %s438_s1 = sshll.u32 %s701_s0, 4  ;;  %s439_s1 = int_to_ptr.vmem [resolvable:$true] %s438_s1 }
  0x1e   :  { %563 = vmatpush3.bf16.msra.mxu0 %v615_v0  ;;  %602 = vmatpush3.bf16.msra.mxu1 %v615_v0  ;;  %v623_v4 = vld [vmem:[#allocation3] sm:$0xff]   ;;  %v620_v7 = vld [vmem:[#allocation6 + $0x10] sm:$0xff]   ;;  %v621_v8 = vld [vmem:[#allocation6 + $0x8] sm:$0xff]   ;;  %s671_s21 = scalar_lea.vmem %s439_s1, 1024  ;;  %p676_p11 = scmp.lt.s32.totalorder %s439_s1, %s439_s1 }
  0x1f   :  { %564 = vmatprep.subr.bf16.mxu0 %v616_v1  ;;  %595 = vmatprep.subr.bf16.mxu1 %v616_v1  ;;  %v624_v5 = vld [vmem:[#allocation3 + $0x20] sm:$0xff]   ;;  %v625_v10 = vld [vmem:[#allocation3 + $0x8] sm:$0xff]   ;;  %v627_v12 = vld [vmem:[#allocation3 + $0x10] sm:$0xff]   ;;  %p672_p10 = scmp.ne.s32.totalorder %s439_s1, %s671_s21  ;;  %p677_p12 = scmp.lt.s32.totalorder %s671_s21, %s671_s21 }
  0x20   :  { %578 = vmatprep.mubr.bf16.mxu0 %v623_v4  ;;  %586 = vmatprep.mubr.bf16.mxu1 %v624_v5  ;;  %v622_v9 = vld [vmem:[#allocation6] sm:$0xff]   ;;  %v626_v11 = vld [vmem:[#allocation3 + $0x28] sm:$0xff]   ;;  %v628_v13 = vld [vmem:[#allocation3 + $0x30] sm:$0xff]  }
  0x21   :  { %v629_v14 = vld [vmem:[#allocation3 + $0x18] sm:$0xff]   ;;  %p678_p13 = por %p677_p12, %p676_p11 }
  0x22   :  { %565 = vmatpush3.bf16.msra.mxu0 %v616_v1  ;;  %603 = vmatpush3.bf16.msra.mxu1 %v616_v1  ;;  %v630_v15 = vld [vmem:[#allocation3 + $0x38] sm:$0xff]  }
  0x23   :  { %566 = vmatprep.subr.bf16.mxu0 %v617_v2  ;;  %596 = vmatprep.subr.bf16.mxu1 %v617_v2  ;;  %p679_p0 = pnand %p678_p13, %p672_p10 }
  0x26   :  { %567 = vmatpush3.bf16.msra.mxu0 %v617_v2  ;;  %604 = vmatpush3.bf16.msra.mxu1 %v617_v2 }
  0x27   :  { %568 = vmatprep.subr.bf16.mxu0 %v618_v3  ;;  %597 = vmatprep.subr.bf16.mxu1 %v618_v3 }
  0x2a   :  { %569 = vmatpush3.bf16.msra.mxu0 %v618_v3  ;;  %605 = vmatpush3.bf16.msra.mxu1 %v618_v3 }
  0x2b   :  { %570 = vmatprep.subr.bf16.mxu0 %v619_v6  ;;  %598 = vmatprep.subr.bf16.mxu1 %v619_v6 }
  0x2e   :  { %571 = vmatpush3.bf16.msra.mxu0 %v619_v6  ;;  %606 = vmatpush3.bf16.msra.mxu1 %v619_v6 }
  0x2f   :  { %572 = vmatprep.subr.bf16.mxu0 %v620_v7  ;;  %599 = vmatprep.subr.bf16.mxu1 %v620_v7 }
  0x32   :  { %573 = vmatpush3.bf16.msra.mxu0 %v620_v7  ;;  %607 = vmatpush3.bf16.msra.mxu1 %v620_v7 }
  0x33   :  { %574 = vmatprep.subr.bf16.mxu0 %v621_v8  ;;  %600 = vmatprep.subr.bf16.mxu1 %v621_v8 }
  0x36   :  { %575 = vmatpush3.bf16.msra.mxu0 %v621_v8  ;;  %608 = vmatpush3.bf16.msra.mxu1 %v621_v8 }
  0x37   :  { %576 = vmatprep.subr.bf16.mxu0 %v622_v9  ;;  %601 = vmatprep.subr.bf16.mxu1 %v622_v9 }
  0x3a   :  { %577 = vmatpush3.bf16.msra.mxu0 %v622_v9  ;;  %609 = vmatpush3.bf16.msra.mxu1 %v622_v9 }
  0x3d   :  { %579 = vmatmul.mubr.bf16.vlgmr.msra.gmra.mxu0 %v625_v10  ;;  %587 = vmatmul.mubr.bf16.vlgmr.msra.gmra.mxu1 %v626_v11 }
  0x3e   :  { %582 = vmatprep.mubr.bf16.mxu0 %v627_v12  ;;  %590 = vmatprep.mubr.bf16.mxu1 %v628_v13 }
  0x45   :  { %583 = vmatmul.mubr.bf16.gmra.mxu0 %v629_v14  ;;  %591 = vmatmul.mubr.bf16.gmra.mxu1 %v630_v15 }
  0xfd   :  { %v580_v16 = vpop.f32.mrf.mxu0  ;;  %v588_v17 = vpop.f32.mrf.mxu1 }
  0xff   :  { %v239_v18 = vpop.f32.mrf.mxu0  ;;  %v271_v19 = vpop.f32.mrf.mxu1 }
 0x101   :  { %v581_v20 = vpop.f32.mrf.mxu0  ;;  %v589_v21 = vpop.f32.mrf.mxu1 }
 0x102   :  { %v507_v22 = vpack.c.bf16 %v581_v20, %v580_v16  ;;  %v527_v23 = vpack.c.bf16 %v589_v21, %v588_v17 }
 0x103   :  { %v242_v24 = vpop.f32.mrf.mxu0  ;;  %v274_v25 = vpop.f32.mrf.mxu1 }
 0x104   :  { %539 = vst [vmem:[#allocation8 + $0x8] sm:$0xff] %v507_v22   ;;  %543 = vst [vmem:[#allocation8 + $0x28] sm:$0xff] %v527_v23   ;;  %v502_v26 = vpack.c.bf16 %v242_v24, %v239_v18  ;;  %v522_v27 = vpack.c.bf16 %v274_v25, %v271_v19 }
 0x105   :  { %v584_v28 = vpop.f32.mrf.mxu0  ;;  %v592_v29 = vpop.f32.mrf.mxu1 }
 0x106   :  { %503 = vst [vmem:[#allocation8] sm:$0xff] %v502_v26   ;;  %542 = vst [vmem:[#allocation8 + $0x20] sm:$0xff] %v522_v27  }
 0x107   :  { %v255_v30 = vpop.f32.mrf.mxu0  ;;  %v287_v31 = vpop.f32.mrf.mxu1 }
 0x109   :  { %v585_v32 = vpop.f32.mrf.mxu0  ;;  %v593_v33 = vpop.f32.mrf.mxu1 }
 0x10a   :  { %v517_v34 = vpack.c.bf16 %v585_v32, %v584_v28  ;;  %v537_v35 = vpack.c.bf16 %v593_v33, %v592_v29 }
 0x10b   :  { %v258_v36 = vpop.f32.mrf.mxu0  ;;  %v290_v37 = vpop.f32.mrf.mxu1 }
 0x10c   :  { %541 = vst [vmem:[#allocation8 + $0x18] sm:$0xff] %v517_v34   ;;  %545 = vst [vmem:[#allocation8 + $0x38] sm:$0xff] %v537_v35   ;;  %v512_v38 = vpack.c.bf16 %v258_v36, %v255_v30  ;;  %v532_v39 = vpack.c.bf16 %v290_v37, %v287_v31 }
 0x10e   :  { %540 = vst [vmem:[#allocation8 + $0x10] sm:$0xff] %v512_v38   ;;  %544 = vst [vmem:[#allocation8 + $0x30] sm:$0xff] %v532_v39  }
 0x10f   :  { %682 = shalt.err (!%p679_p0)
}
 0x110   :  { %444 = dma.vmem_to_hbm [thread:$0]  %s439_s1, 1024, %s737_s2, [#allocation5], %s698_s12, %s698_s12, %s699_s13  }
 0x111   :  { %695 = dma.done.wait [#allocation5], 1024  }
 0x112   :  { %696 = vsyncadd [#allocation5], 4294966272 }
 0x113   :  { %448 = vsyncpa [#allocation4], 1 }
 0x114   :  { %449 = vsyncpa [#allocation7], 1 }
 0x115   :  { %450 = vsyncpa [#allocation5], 1 }

</bundles_post_ra>
